<compile_context>
chip_gen: v7x
topology: tpu7x:2x2x1
jax: 0.10.0
libtpu: 0.0.40
codegen_flags: <defaults>
</compile_context>

<pallas_src>
import math
from functools import partial

import jax
import jax.numpy as jnp
from jax.experimental import pallas as pl
from jax.experimental.pallas import tpu as pltpu


# --------------------------------------------------------------------------- #
# Kernels
# --------------------------------------------------------------------------- #

def _ln_lane_kernel(x_ref, g_ref, o_ref, *, eps, stable, inv_feats):
    """Normalize over the lane (last) axis.  x:(tr, F), g:(1, F) float32."""
    x = x_ref[...].astype(jnp.float32)
    mean = jnp.sum(x, axis=-1, keepdims=True) * inv_feats
    d = x - mean
    var = jnp.sum(d * d, axis=-1, keepdims=True) * inv_feats      # two-pass var
    if stable:
        # torch: x = x / x.amax(dim, keepdim=True).detach().  The output is
        # scale-invariant except through eps, so fold c ~= 1/amax into the
        # per-row scale instead of rescaling the whole tile (saves one
        # full-tile VALU multiply; the reciprocal rides the EUP slot).
        c = pl.reciprocal(jnp.max(x, axis=-1, keepdims=True), approx=True)
        scale = c * jax.lax.rsqrt(var * (c * c) + eps)
    else:
        scale = jax.lax.rsqrt(var + eps)
    o_ref[...] = (d * scale * g_ref[...]).astype(o_ref.dtype)


def _seg_sum(v, seg):
    # Segmented row-sum on the (otherwise idle) MXU via a block-diagonal ones
    # matrix; each lane receives its own group's sum (already broadcast).
    # Split v into a bf16-exact high part plus a small remainder so the sums
    # keep ~f32 accuracy regardless of the default matmul precision.
    hi = v.astype(jnp.bfloat16).astype(jnp.float32)
    lo = v - hi
    return (jnp.dot(hi, seg, preferred_element_type=jnp.float32)
            + jnp.dot(lo, seg, preferred_element_type=jnp.float32))


def _ln_packed_kernel(x_ref, g_ref, seg_ref, o_ref, *, eps, inv_feats):
    """Lane-packed small-feats path (k = 128 // F rows folded into the lanes).

    x:(tr, 128), g:(1, 128) = gain tiled k times, seg:(128, 128) block-diagonal
    ones.  Loads/stores are lane-dense (no masked vst) and the segmented
    reductions run on the MXU, so there is no cross-lane XLU tree at all.
    The ragged grid tail only masks whole packed rows (whole groups), so no
    valid row ever mixes with garbage.
    """
    x = x_ref[...].astype(jnp.float32)
    seg = seg_ref[...]
    mean = _seg_sum(x, seg) * inv_feats
    d = x - mean
    var = _seg_sum(d * d, seg) * inv_feats                        # two-pass var
    o_ref[...] = (d * jax.lax.rsqrt(var + eps) * g_ref[...]).astype(o_ref.dtype)


def _ln_sublane_kernel(x_ref, g_ref, o_ref, *, eps, stable, inv_feats):
    """Normalize over the second-to-last (sublane) axis.

    Used for dim != -1 on a free (pre, F, post) reshape -- no HBM transposes.
    x:(tp, F, tq), g:(1, F, 1) float32.
    """
    x = x_ref[...].astype(jnp.float32)
    mean = jnp.sum(x, axis=-2, keepdims=True) * inv_feats
    d = x - mean
    var = jnp.sum(d * d, axis=-2, keepdims=True) * inv_feats      # two-pass var
    if stable:
        c = pl.reciprocal(jnp.max(x, axis=-2, keepdims=True), approx=True)
        scale = c * jax.lax.rsqrt(var * (c * c) + eps)
    else:
        scale = jax.lax.rsqrt(var + eps)
    o_ref[...] = (d * scale * g_ref[...]).astype(o_ref.dtype)


# --------------------------------------------------------------------------- #
# Tiling / VMEM heuristics (per-chip)
# --------------------------------------------------------------------------- #

def _vmem_capacity_bytes():
    try:
        cap = getattr(pltpu.get_tpu_info(), "vmem_capacity_bytes", None)
        if cap:
            return int(cap)
    except Exception:
        pass
    return 64 << 20  # conservative default (v7x per-TensorCore VMEM)


def _sublane(itemsize):
    # vregs pack sub-32-bit dtypes along sublanes: 8 (f32) / 16 (bf16) / 32 (i8).
    return max(8, 32 // max(1, itemsize))


def _target_block_bytes(vmem_cap):
    # ~4 MiB blocks on 64 MiB parts (v7x), ~8 MiB on 128 MiB parts (v5e/v6e):
    # big enough to amortize the ~0.35us/step grid overhead, small enough that
    # double-buffered I/O plus f32 temporaries stay under the VMEM cap below.
    return int(min(8 << 20, max(1 << 20, vmem_cap // 16)))


def _vmem_limit_bytes(vmem_cap, io_bytes):
    # Roomy bound for Mosaic scoped VMEM (pipeline buffers + f32 temporaries),
    # but never the whole physical VMEM (leave headroom, esp. v7x's 64 MiB).
    cap = int(vmem_cap * 3 // 4)
    return int(min(cap, max(32 << 20, 6 * io_bytes)))


def _pick_tile_rows(rows, row_bytes, itemsize, vmem_cap):
    sub = _sublane(itemsize)
    target = _target_block_bytes(vmem_cap)
    tr = max(sub, (target // max(1, row_bytes)) // sub * sub)
    # Keep >= 8 grid steps (>= 2 when small): lets the 'parallel' axis shard
    # across both v7x TensorCores and gives the DMA pipeline some depth.
    for min_steps in (8, 2):
        if rows >= min_steps * sub:
            cap = (-(-rows // min_steps) + sub - 1) // sub * sub
            tr = min(tr, max(sub, cap))
            break
    if tr >= rows:
        return rows            # single full-extent block (always layout-legal)
    return tr                  # sublane-aligned; ragged tail rows are masked


def _pick_axis_tiles(pre, feats, post, itemsize, vmem_cap):
    target = _target_block_bytes(vmem_cap)
    col_bytes = max(1, feats * itemsize)
    if post > 128 and post % 128 == 0:
        tq = min(post, max(128, (target // col_bytes) // 128 * 128))
    else:
        tq = post              # full lane extent (always layout-legal)
    slab = max(1, feats * tq * itemsize)
    tp = max(1, min(pre, target // slab))
    # Prefer a handful of grid steps (megacore / pipelining) by splitting the
    # leading dim, which has no layout constraints.
    while tp > 1 and pl.cdiv(pre, tp) * pl.cdiv(post, tq) < 8:
        tp = (tp + 1) // 2
    return tp, tq


# --------------------------------------------------------------------------- #
# Wrapper
# --------------------------------------------------------------------------- #

def layer_norm(x, g, *, stable=False, dim=-1):
    """Pallas LayerNorm matching the PyTorch module's forward semantics.

    x : array of any rank; normalization over axis `dim`.
    g : gain of shape (feats, 1, ..., 1) -- the torch Parameter layout.
    """
    orig_shape = x.shape
    dtype = x.dtype
    itemsize = jnp.dtype(dtype).itemsize
    axis = dim if dim >= 0 else x.ndim + dim
    feats = x.shape[axis]
    eps = 1e-05 if dtype == jnp.float32 else 1e-03   # exactly as the torch forward
    g32 = jnp.asarray(g, jnp.float32).reshape(feats)  # gain applied in float32
    vmem_cap = _vmem_capacity_bytes()

    if axis == x.ndim - 1:
        rows = math.prod(x.shape[:-1])
        x2d = x.reshape(rows, feats)               # contiguous merge, no transpose

        k = 128 // feats if (feats < 128 and 128 % feats == 0) else 0
        if k > 1 and not stable and rows % k == 0:
            # ------- lane-packed path: fold k rows into the 128-lane dim -----
            rows_p = rows // k
            lanes = k * feats                      # == 128
            xp = x2d.reshape(rows_p, lanes)
            g_row = jnp.tile(g32, k).reshape(1, lanes)
            lane = jnp.arange(lanes, dtype=jnp.int32)
            seg = (lane[:, None] // feats == lane[None, :] // feats).astype(jnp.float32)
            tr = _pick_tile_rows(rows_p, lanes * itemsize, itemsize, vmem_cap)
            io = 2 * tr * lanes * itemsize + (lanes + lanes * lanes) * 4
            out = pl.pallas_call(
                partial(_ln_packed_kernel, eps=eps, inv_feats=1.0 / feats),
                out_shape=jax.ShapeDtypeStruct((rows_p, lanes), dtype),
                grid_spec=pltpu.PrefetchScalarGridSpec(
                    num_scalar_prefetch=0,
                    grid=(pl.cdiv(rows_p, tr),),
                    in_specs=[
                        pl.BlockSpec((tr, lanes), lambda i: (i, 0)),
                        pl.BlockSpec((1, lanes), lambda i: (0, 0)),
                        pl.BlockSpec((lanes, lanes), lambda i: (0, 0)),
                    ],
                    out_specs=pl.BlockSpec((tr, lanes), lambda i: (i, 0)),
                ),
                compiler_params=pltpu.CompilerParams(
                    dimension_semantics=("parallel",),
                    vmem_limit_bytes=_vmem_limit_bytes(vmem_cap, io),
                ),
            )(xp, g_row, seg)
            return out.reshape(orig_shape)

        # ------- plain lane-reduction path --------------------------------
        # TODO(synk): feats < 128 with stable=True (or feats not dividing 128)
        # still takes this lane-sparse path; a segmented-max lane-packed variant
        # would make those stores dense too.
        g_row = g32.reshape(1, feats)
        tr = _pick_tile_rows(rows, feats * itemsize, itemsize, vmem_cap)
        io = 2 * tr * feats * itemsize + feats * 4
        out = pl.pallas_call(
            partial(_ln_lane_kernel, eps=eps, stable=stable, inv_feats=1.0 / feats),
            out_shape=jax.ShapeDtypeStruct((rows, feats), dtype),
            grid_spec=pltpu.PrefetchScalarGridSpec(
                num_scalar_prefetch=0,
                grid=(pl.cdiv(rows, tr),),
                in_specs=[
                    pl.BlockSpec((tr, feats), lambda i: (i, 0)),
                    pl.BlockSpec((1, feats), lambda i: (0, 0)),
                ],
                out_specs=pl.BlockSpec((tr, feats), lambda i: (i, 0)),
            ),
            compiler_params=pltpu.CompilerParams(
                dimension_semantics=("parallel",),
                vmem_limit_bytes=_vmem_limit_bytes(vmem_cap, io),
            ),
        )(x2d, g_row)
        return out.reshape(orig_shape)

    # ---- dim != -1: sublane-reduction kernel over a free (pre, F, post) view.
    # No moveaxis / transposes -> no extra HBM round trips.
    pre = math.prod(x.shape[:axis])
    post = math.prod(x.shape[axis + 1:])
    x3d = x.reshape(pre, feats, post)              # contiguous merges, free
    g3d = g32.reshape(1, feats, 1)
    tp, tq = _pick_axis_tiles(pre, feats, post, itemsize, vmem_cap)
    io = 2 * tp * feats * tq * itemsize + feats * 4
    # TODO(synk): for extremely large feats where a single (1, F, 128) slab no
    # longer fits in ~1/4 of VMEM, accumulate the stats over feature chunks in
    # an inner loop instead of loading the full feats extent per block.
    out = pl.pallas_call(
        partial(_ln_sublane_kernel, eps=eps, stable=stable, inv_feats=1.0 / feats),
        out_shape=jax.ShapeDtypeStruct((pre, feats, post), dtype),
        grid_spec=pltpu.PrefetchScalarGridSpec(
            num_scalar_prefetch=0,
            grid=(pl.cdiv(pre, tp), pl.cdiv(post, tq)),
            in_specs=[
                pl.BlockSpec((tp, feats, tq), lambda p, q: (p, 0, q)),
                pl.BlockSpec((1, feats, 1), lambda p, q: (0, 0, 0)),
            ],
            out_specs=pl.BlockSpec((tp, feats, tq), lambda p, q: (p, 0, q)),
        ),
        compiler_params=pltpu.CompilerParams(
            dimension_semantics=("parallel", "parallel"),
            vmem_limit_bytes=_vmem_limit_bytes(vmem_cap, io),
        ),
    )(x3d, g3d)
    return out.reshape(orig_shape)


def layer_norm_ref(x, g, *, stable=False, dim=-1):
    """Pure-JAX reference mirroring the torch forward exactly."""
    if stable:
        x = x / jnp.max(x, axis=dim, keepdims=True)
    eps = 1e-05 if x.dtype == jnp.float32 else 1e-03
    mean = jnp.mean(x, axis=dim, keepdims=True)
    var = jnp.mean(jnp.square(x - mean), axis=dim, keepdims=True)
    return (x - mean) * jax.lax.rsqrt(var + eps) * g.astype(x.dtype)


if __name__ == "__main__":
    key = jax.random.PRNGKey(0)
    k1, k2, k3 = jax.random.split(key, 3)

    # Case 1: LayerNorm(feats=32, dim=-1) on (batch=2, seq=8, hidden=32)
    #         -> lane-packed kernel (k=4 rows per 128-lane row, MXU seg-sums).
    x1 = jax.random.normal(k1, (2, 8, 32), dtype=jnp.float32)
    g1 = jnp.ones((32,), dtype=jnp.float32)
    y1 = layer_norm(x1, g1, stable=False, dim=-1)
    jax.block_until_ready(y1)
    r1 = layer_norm_ref(x1, g1, stable=False, dim=-1)
    assert y1.shape == x1.shape and y1.dtype == x1.dtype
    assert jnp.allclose(y1, r1, atol=1e-4, rtol=1e-4), "case 1 mismatch vs reference"

    # Case 2: LayerNorm(feats=7, stable=True, dim=-2) on (2, 7, 32), g (7, 1)
    #         -> sublane-reduction kernel (no wrapper-side transpose).
    x2 = jax.random.uniform(k2, (2, 7, 32), dtype=jnp.float32, minval=0.5, maxval=2.0)
    g2 = jnp.ones((7, 1), dtype=jnp.float32)
    y2 = layer_norm(x2, g2, stable=True, dim=-2)
    jax.block_until_ready(y2)
    r2 = layer_norm_ref(x2, g2, stable=True, dim=-2)
    assert y2.shape == x2.shape and y2.dtype == x2.dtype
    assert jnp.allclose(y2, r2, atol=1e-4, rtol=1e-4), "case 2 mismatch vs reference"

    # Case 3: LayerNorm(feats=128, stable=True, dim=-1) on (2, 8, 128)
    #         -> plain lane-reduction kernel with the folded stable scale.
    x3 = jax.random.normal(k3, (2, 8, 128), dtype=jnp.float32) + 0.5
    g3 = jnp.ones((128,), dtype=jnp.float32)
    y3 = layer_norm(x3, g3, stable=True, dim=-1)
    jax.block_until_ready(y3)
    r3 = layer_norm_ref(x3, g3, stable=True, dim=-1)
    assert y3.shape == x3.shape and y3.dtype == x3.dtype
    assert jnp.allclose(y3, r3, atol=1e-4, rtol=1e-4), "case 3 mismatch vs reference"

    print("KERNEL_OK")
</pallas_src>

<mosaic_0001>
module attributes {stable_mosaic.version = 11 : i64} {
  func.func @_ln_packed_kernel(%arg0: i32, %arg1: memref<4x128xf32, #tpu.memory_space<vmem>>, %arg2: memref<1x128xf32, #tpu.memory_space<vmem>>, %arg3: memref<128x128xf32, #tpu.memory_space<vmem>>, %arg4: memref<4x128xf32, #tpu.memory_space<vmem>>) attributes {dimension_semantics = [#tpu.dimension_semantics<parallel>], iteration_bounds = array<i64: 1>, scalar_prefetch = 0 : i64, scratch_operands = 0 : i64, tpu.core_type = #tpu.core_type<tc>, window_params = [{transform_indices = @transform_0, window_bounds = array<i64: 4, 128>}, {pipeline_mode = #tpu.pipeline_mode<synchronous>, transform_indices = @transform_1, window_bounds = array<i64: 1, 128>}, {pipeline_mode = #tpu.pipeline_mode<synchronous>, transform_indices = @transform_2, window_bounds = array<i64: 128, 128>}, {transform_indices = @transform_3, window_bounds = array<i64: 4, 128>}]} {
    %c0 = arith.constant 0 : index
    %c0_0 = arith.constant 0 : index
    %0 = vector.load %arg1[%c0, %c0_0] : memref<4x128xf32, #tpu.memory_space<vmem>>, vector<4x128xf32>
    %c0_1 = arith.constant 0 : index
    %c0_2 = arith.constant 0 : index
    %1 = vector.load %arg3[%c0_1, %c0_2] : memref<128x128xf32, #tpu.memory_space<vmem>>, vector<128x128xf32>
    %2 = arith.truncf %0 : vector<4x128xf32> to vector<4x128xbf16>
    %3 = arith.extf %2 : vector<4x128xbf16> to vector<4x128xf32>
    %4 = arith.subf %0, %3 : vector<4x128xf32>
    %cst = arith.constant dense<0.000000e+00> : vector<4x128xf32>
    %5 = tpu.matmul %3, %1, %cst {dimension_numbers = #tpu.dot_dimension_numbers<[1], [0], [0], [1], [0, 0, 1, 1], [], []>} : vector<4x128xf32>, vector<128x128xf32>, vector<4x128xf32> -> vector<4x128xf32>
    %cst_3 = arith.constant dense<0.000000e+00> : vector<4x128xf32>
    %6 = tpu.matmul %4, %1, %cst_3 {dimension_numbers = #tpu.dot_dimension_numbers<[1], [0], [0], [1], [0, 0, 1, 1], [], []>} : vector<4x128xf32>, vector<128x128xf32>, vector<4x128xf32> -> vector<4x128xf32>
    %7 = arith.addf %5, %6 : vector<4x128xf32>
    %cst_4 = arith.constant 3.125000e-02 : f32
    %8 = vector.broadcast %cst_4 : f32 to vector<4x128xf32>
    %9 = arith.mulf %7, %8 : vector<4x128xf32>
    %10 = arith.subf %0, %9 : vector<4x128xf32>
    %11 = arith.mulf %10, %10 : vector<4x128xf32>
    %12 = arith.truncf %11 : vector<4x128xf32> to vector<4x128xbf16>
    %13 = arith.extf %12 : vector<4x128xbf16> to vector<4x128xf32>
    %14 = arith.subf %11, %13 : vector<4x128xf32>
    %cst_5 = arith.constant dense<0.000000e+00> : vector<4x128xf32>
    %15 = tpu.matmul %13, %1, %cst_5 {dimension_numbers = #tpu.dot_dimension_numbers<[1], [0], [0], [1], [0, 0, 1, 1], [], []>} : vector<4x128xf32>, vector<128x128xf32>, vector<4x128xf32> -> vector<4x128xf32>
    %cst_6 = arith.constant dense<0.000000e+00> : vector<4x128xf32>
    %16 = tpu.matmul %14, %1, %cst_6 {dimension_numbers = #tpu.dot_dimension_numbers<[1], [0], [0], [1], [0, 0, 1, 1], [], []>} : vector<4x128xf32>, vector<128x128xf32>, vector<4x128xf32> -> vector<4x128xf32>
    %17 = arith.addf %15, %16 : vector<4x128xf32>
    %cst_7 = arith.constant 3.125000e-02 : f32
    %18 = vector.broadcast %cst_7 : f32 to vector<4x128xf32>
    %19 = arith.mulf %17, %18 : vector<4x128xf32>
    %cst_8 = arith.constant 9.99999974E-6 : f32
    %20 = vector.broadcast %cst_8 : f32 to vector<4x128xf32>
    %21 = arith.addf %19, %20 : vector<4x128xf32>
    %22 = math.rsqrt %21 : vector<4x128xf32>
    %23 = arith.mulf %10, %22 : vector<4x128xf32>
    %c0_9 = arith.constant 0 : index
    %c0_10 = arith.constant 0 : index
    %24 = vector.load %arg2[%c0_9, %c0_10] : memref<1x128xf32, #tpu.memory_space<vmem>>, vector<1x128xf32>
    %25 = vector.broadcast %24 : vector<1x128xf32> to vector<4x128xf32>
    %26 = arith.mulf %23, %25 : vector<4x128xf32>
    %c0_11 = arith.constant 0 : index
    %c0_12 = arith.constant 0 : index
    %27 = vector.load %arg4[%c0_11, %c0_12] : memref<4x128xf32, #tpu.memory_space<vmem>>, vector<4x128xf32>
    tpu.vector_store %arg4[%c0_11, %c0_12], %26 {strides = array<i32>} : memref<4x128xf32, #tpu.memory_space<vmem>>, vector<4x128xf32>,
    return
  }
  func.func @transform_0(%arg0: i32) -> (i32, i32) {
    %c0_i32 = arith.constant 0 : i32
    %c0_i32_0 = arith.constant 0 : i32
    return %arg0, %c0_i32 : i32, i32
  }
  func.func @transform_1(%arg0: i32) -> (i32, i32) {
    %c0_i32 = arith.constant 0 : i32
    %c0_i32_0 = arith.constant 0 : i32
    %c0_i32_1 = arith.constant 0 : i32
    return %c0_i32, %c0_i32_0 : i32, i32
  }
  func.func @transform_2(%arg0: i32) -> (i32, i32) {
    %c0_i32 = arith.constant 0 : i32
    %c0_i32_0 = arith.constant 0 : i32
    %c0_i32_1 = arith.constant 0 : i32
    return %c0_i32, %c0_i32_0 : i32, i32
  }
  func.func @transform_3(%arg0: i32) -> (i32, i32) {
    %c0_i32 = arith.constant 0 : i32
    %c0_i32_0 = arith.constant 0 : i32
    return %arg0, %c0_i32 : i32, i32
  }
}

</mosaic_0001>

<bundles_post_ra>
// kernel: tpu_custom_call.1
= control target key start
LH: loop header
LB: loop body
LE: loop exit
PB: predicated region body
PF: predicated region fallthrough
CT: control target
= control target key end

     0   :  { %8 = vsyncpa [#allocation3], 0  ;;  %s917_s0 = inlined_call_operand.hbm [shape: f32[4,128], index: 0, kind: input, shape index: {}]   ;;  %s918_s1 = inlined_call_operand.vmem [shape: f32[1,128], index: 1, kind: input, shape index: {}]   ;;  %s919_s2 = inlined_call_operand.hbm [shape: f32[128,128], index: 2, kind: input, shape index: {}]   ;;  %s920_s3 = inlined_call_operand.hbm [shape: f32[4,128], index: 3, kind: output, shape index: {}]  }
   0x1   :  { %9 = vsyncpa [#allocation6], 0 }
   0x2   :  { %10 = vsyncpa [#allocation4], 0  ;;  %s767_s12 = smov [#allocation2]   ;;  %s768_s14 = smov [#allocation5]  }
   0x3   :  { %s17_s13 = sshll.u32 %s767_s12, 4  ;;  %s28_s15 = sshll.u32 %s768_s14, 4  ;;  %s18_s13 = int_to_ptr.vmem [resolvable:$true] %s17_s13  ;;  %s795_s15 = int_to_ptr.vmem [resolvable:$true] %s28_s15 }
   0x4   :  { %s695_s18 = scalar_lea.hbm %s917_s0, 64 }
   0x5   :  { %p696_p0 = scmp.ne.s32.totalorder %s917_s0, %s695_s18  ;;  %p699_p1 = scmp.lt.u32.totalorder %s695_s18, %s917_s0 }
   0x7   :  { %p701_p2 = pnand %p699_p1, %p696_p0 }
   0x9   :  { %704 = shalt.err (!%p701_p2)
}
   0xa   :  { %s705_s23 = scalar_lea.vmem %s18_s13, 64  ;;  %p710_p4 = scmp.lt.s32.totalorder %s18_s13, %s18_s13 }
   0xb   :  { %p706_p3 = scmp.ne.s32.totalorder %s18_s13, %s705_s23  ;;  %p711_p5 = scmp.lt.s32.totalorder %s705_s23, %s705_s23 }
   0xd   :  { %p712_p6 = por %p711_p5, %p710_p4 }
   0xf   :  { %p713_p7 = pnand %p712_p6, %p706_p3 }
  0x11   :  { %716 = shalt.err (!%p713_p7)
}
  0x12   :  { %20 = dma.hbm_to_vmem [thread:$0]  %s917_s0, 64, %s18_s13, [#allocation3]  }
  0x13   :  { %s717_s28 = scalar_lea.hbm %s919_s2, 2048 }
  0x14   :  { %p718_p8 = scmp.ne.s32.totalorder %s919_s2, %s717_s28  ;;  %p721_p9 = scmp.lt.u32.totalorder %s717_s28, %s919_s2 }
  0x16   :  { %p723_p10 = pnand %p721_p9, %p718_p8 }
  0x18   :  { %726 = shalt.err (!%p723_p10)
}
  0x19   :  { %s727_s6 = scalar_lea.vmem %s795_s15, 2048  ;;  %p732_p12 = scmp.lt.s32.totalorder %s795_s15, %s795_s15 }
  0x1a   :  { %p728_p11 = scmp.ne.s32.totalorder %s795_s15, %s727_s6  ;;  %p733_p13 = scmp.lt.s32.totalorder %s727_s6, %s727_s6 }
  0x1c   :  { %p734_p0 = por %p733_p13, %p732_p12 }
  0x1e   :  { %p735_p1 = pnand %p734_p0, %p728_p11 }
  0x20   :  { %738 = shalt.err (!%p735_p1)
}
  0x21   :  { %s769_s0 = smov 128   ;;  %s770_s7 = smov 8  }
  0x22   :  { %34 = dma.hbm_to_vmem [thread:$0]  %s919_s2, 2048, %s795_s15, [#allocation6], %s769_s0, %s769_s0, %s770_s7  }
  0x23   :  { %761 = dma.done.wait [#allocation3], 64  }
  0x24   :  { %762 = vsyncadd [#allocation3], 4294967232 }
  0x25   :  { %763 = dma.done.wait [#allocation6], 2048  }
  0x26   :  { %764 = vsyncadd [#allocation6], 4294965248  ;;  %v771_v0 = vmov 0.0|0.0   ;;  %vm772_vm0 = vmmov 0   ;;  %v773_v1 = vmov 0.0   ;;  %v42_v2 = vld [vmem:[#allocation5] sm:$0xff] }
  0x27   :  { %585 = vmatprep.subr.bf16.mxu0 %v771_v0  ;;  %477 = vmatprep.mubr.msk.f32.mxu0 %vm772_vm0, %v773_v1  ;;  %v43_v3 = vld [vmem:[#allocation5 + $0x8] sm:$0xff]  ;;  %v44_v4 = vld [vmem:[#allocation5 + $0x10] sm:$0xff]  ;;  %v45_v6 = vld [vmem:[#allocation5 + $0x18] sm:$0xff]  ;;  %s774_s11 = smov [#allocation7]  }
  0x28   :  { %633 = vmatprep.subr.bf16.mxu1 %v771_v0  ;;  %547 = vmatprep.mubr.msk.f32.mxu1 %vm772_vm0, %v773_v1  ;;  %v832_v5 = vpack.c.bf16 %v43_v3, %v42_v2  ;;  %v835_v7 = vpack.c.bf16 %v45_v6, %v44_v4  ;;  %v46_v8 = vld [vmem:[#allocation5 + $0x20] sm:$0xff]  ;;  %v47_v9 = vld [vmem:[#allocation5 + $0x28] sm:$0xff]  ;;  %v48_v11 = vld [vmem:[#allocation5 + $0x30] sm:$0xff]  ;;  %s366_s12 = sshll.u32 %s774_s11, 4  ;;  %s367_s12 = int_to_ptr.vmem [resolvable:$true] %s366_s12 }
  0x29   :  { %v841_v10 = vpack.c.bf16 %v47_v9, %v46_v8  ;;  %v49_v12 = vld [vmem:[#allocation5 + $0x38] sm:$0xff]  ;;  %v50_v14 = vld [vmem:[#allocation5 + $0x40] sm:$0xff]  ;;  %v51_v15 = vld [vmem:[#allocation5 + $0x48] sm:$0xff]  ;;  %s739_s13 = scalar_lea.vmem %s367_s12, 64  ;;  %p744_p3 = scmp.lt.s32.totalorder %s367_s12, %s367_s12 }
  0x2a   :  { %587 = vmatpush3.bf16.msra.mxu0 %v832_v5  ;;  %635 = vmatpush3.bf16.msra.mxu1 %v832_v5  ;;  %v847_v13 = vpack.c.bf16 %v49_v12, %v48_v11  ;;  %v853_v16 = vpack.c.bf16 %v51_v15, %v50_v14  ;;  %v52_v17 = vld [vmem:[#allocation5 + $0x50] sm:$0xff]  ;;  %v53_v18 = vld [vmem:[#allocation5 + $0x58] sm:$0xff]  ;;  %v54_v21 = vld [vmem:[#allocation5 + $0x60] sm:$0xff]  ;;  %p740_p2 = scmp.ne.s32.totalorder %s367_s12, %s739_s13  ;;  %p745_p4 = scmp.lt.s32.totalorder %s739_s13, %s739_s13 }
  0x2b   :  { %588 = vmatprep.subr.bf16.mxu0 %v771_v0  ;;  %636 = vmatprep.subr.bf16.mxu1 %v771_v0  ;;  %v859_v19 = vpack.c.bf16 %v53_v18, %v52_v17  ;;  %v41_v20 = vld [vmem:[#allocation2] sm:$0xf]  ;;  %v55_v22 = vld [vmem:[#allocation5 + $0x68] sm:$0xff]  ;;  %v56_v25 = vld [vmem:[#allocation5 + $0x70] sm:$0xff] }
  0x2c   :  { %v58_v23 = vpack.c.bf16 %v41_v20, %v41_v20  ;;  %v604_v24 = vpack.c.bf16 %v55_v22, %v54_v21  ;;  %v57_v26 = vld [vmem:[#allocation5 + $0x78] sm:$0xff]  ;;  %p746_p5 = por %p745_p4, %p744_p3 }
  0x2d   :  { %v607_v28 = vpack.c.bf16 %v57_v26, %v56_v25  ;;  %v376_v43 = vld [vmem:[%s918_s1] ss:$0 sm:$0xff] }
  0x2e   :  { %590 = vmatpush3.bf16.msra.mxu0 %v835_v7  ;;  %638 = vmatpush3.bf16.msra.mxu1 %v835_v7  ;;  %v59_v27 = vunpack.c.l.bf16 %v58_v23  ;;  %p747_p6 = pnand %p746_p5, %p740_p2 }
  0x2f   :  { %591 = vmatprep.subr.bf16.mxu0 %v771_v0  ;;  %639 = vmatprep.subr.bf16.mxu1 %v771_v0 }
  0x30   :  { %v60_v29 = vsub.f32 %v41_v20, %v59_v27 }
  0x32   :  { %593 = vmatpush3.bf16.msra.mxu0 %v841_v10  ;;  %641 = vmatpush3.bf16.msra.mxu1 %v841_v10 }
  0x33   :  { %594 = vmatprep.subr.bf16.mxu0 %v771_v0  ;;  %642 = vmatprep.subr.bf16.mxu1 %v771_v0 }
  0x36   :  { %596 = vmatpush3.bf16.msra.mxu0 %v847_v13  ;;  %644 = vmatpush3.bf16.msra.mxu1 %v847_v13 }
  0x37   :  { %597 = vmatprep.subr.bf16.mxu0 %v771_v0  ;;  %645 = vmatprep.subr.bf16.mxu1 %v771_v0 }
  0x3a   :  { %599 = vmatpush3.bf16.msra.mxu0 %v853_v16  ;;  %647 = vmatpush3.bf16.msra.mxu1 %v853_v16 }
  0x3b   :  { %600 = vmatprep.subr.bf16.mxu0 %v771_v0  ;;  %648 = vmatprep.subr.bf16.mxu1 %v771_v0 }
  0x3e   :  { %602 = vmatpush3.bf16.msra.mxu0 %v859_v19  ;;  %650 = vmatpush3.bf16.msra.mxu1 %v859_v19 }
  0x3f   :  { %603 = vmatprep.subr.bf16.mxu0 %v771_v0  ;;  %651 = vmatprep.subr.bf16.mxu1 %v771_v0 }
  0x42   :  { %605 = vmatpush3.bf16.msra.mxu0 %v604_v24  ;;  %653 = vmatpush3.bf16.msra.mxu1 %v604_v24 }
  0x43   :  { %606 = vmatprep.subr.bf16.mxu0 %v771_v0  ;;  %654 = vmatprep.subr.bf16.mxu1 %v771_v0 }
  0x46   :  { %608 = vmatpush3.bf16.msra.mxu0 %v607_v28  ;;  %656 = vmatpush3.bf16.msra.mxu1 %v607_v28 }
  0x47   :  { %609 = vmatprep.subr.bf16.mxu0 %v771_v0  ;;  %657 = vmatprep.subr.bf16.mxu1 %v771_v0 }
  0x49   :  { %478 = vmatmul.mubr.f32.vlgmr.msra.gmra.mrb[0].mxu0 %v60_v29 }
  0x4a   :  { %611 = vmatpush3.bf16.msra.mxu0 %v832_v5  ;;  %512 = vmatprep.mubr.msk.f32.mxu0 %vm772_vm0, %v773_v1 }
  0x4b   :  { %612 = vmatprep.subr.bf16.mxu0 %v771_v0 }
  0x4e   :  { %614 = vmatpush3.bf16.msra.mxu0 %v835_v7 }
  0x4f   :  { %615 = vmatprep.subr.bf16.mxu0 %v771_v0 }
  0x52   :  { %617 = vmatpush3.bf16.msra.mxu0 %v841_v10 }
  0x53   :  { %618 = vmatprep.subr.bf16.mxu0 %v771_v0 }
  0x56   :  { %620 = vmatpush3.bf16.msra.mxu0 %v847_v13 }
  0x57   :  { %621 = vmatprep.subr.bf16.mxu0 %v771_v0 }
  0x5a   :  { %623 = vmatpush3.bf16.msra.mxu0 %v853_v16 }
  0x5b   :  { %624 = vmatprep.subr.bf16.mxu0 %v771_v0 }
  0x5e   :  { %626 = vmatpush3.bf16.msra.mxu0 %v859_v19 }
  0x5f   :  { %627 = vmatprep.subr.bf16.mxu0 %v771_v0 }
  0x62   :  { %629 = vmatpush3.bf16.msra.mxu0 %v604_v24 }
  0x63   :  { %630 = vmatprep.subr.bf16.mxu0 %v771_v0 }
  0x66   :  { %632 = vmatpush3.bf16.msra.mxu0 %v607_v28 }
  0x69   :  { %513 = vmatmul.mubr.f32.vlgmr.msra.gmra.mrb[0].mxu0 %v59_v27 }
 0x13c   :  { %v197_v30 = vpop.f32.mrb[0].mxu0 }
 0x13d   :  { %v201_v31 = vmul.f32 0.03125, %v197_v30  ;;  %v514_v32 = vpop.f32.mrb[1].mxu0 }
 0x13f   :  { %v202_v33 = vsub.f32 %v41_v20, %v201_v31 }
 0x141   :  { %v203_v34 = vmul.f32 %v202_v33, %v202_v33 }
 0x143   :  { %v204_v35 = vpack.c.bf16 %v203_v34, %v203_v34 }
 0x145   :  { %v205_v36 = vunpack.c.l.bf16 %v204_v35 }
 0x147   :  { %v206_v37 = vsub.f32 %v203_v34, %v205_v36 }
 0x149   :  { %548 = vmatmul.mubr.f32.vlgmr.msra.gmra.mrb[0].mxu1 %v206_v37 }
 0x14a   :  { %659 = vmatpush3.bf16.msra.mxu1 %v832_v5  ;;  %582 = vmatprep.mubr.msk.f32.mxu1 %vm772_vm0, %v773_v1 }
 0x14b   :  { %660 = vmatprep.subr.bf16.mxu1 %v771_v0 }
 0x14e   :  { %662 = vmatpush3.bf16.msra.mxu1 %v835_v7 }
 0x14f   :  { %663 = vmatprep.subr.bf16.mxu1 %v771_v0 }
 0x152   :  { %665 = vmatpush3.bf16.msra.mxu1 %v841_v10 }
 0x153   :  { %666 = vmatprep.subr.bf16.mxu1 %v771_v0 }
 0x156   :  { %668 = vmatpush3.bf16.msra.mxu1 %v847_v13 }
 0x157   :  { %669 = vmatprep.subr.bf16.mxu1 %v771_v0 }
 0x15a   :  { %671 = vmatpush3.bf16.msra.mxu1 %v853_v16 }
 0x15b   :  { %672 = vmatprep.subr.bf16.mxu1 %v771_v0 }
 0x15e   :  { %674 = vmatpush3.bf16.msra.mxu1 %v859_v19 }
 0x15f   :  { %675 = vmatprep.subr.bf16.mxu1 %v771_v0 }
 0x162   :  { %677 = vmatpush3.bf16.msra.mxu1 %v604_v24 }
 0x163   :  { %678 = vmatprep.subr.bf16.mxu1 %v771_v0 }
 0x166   :  { %680 = vmatpush3.bf16.msra.mxu1 %v607_v28 }
 0x169   :  { %583 = vmatmul.mubr.f32.vlgmr.msra.gmra.mrb[0].mxu1 %v205_v36 }
 0x23c   :  { %v343_v38 = vpop.f32.mrb[0].mxu1 }
 0x23d   :  { %v347_v39 = vmul.f32 0.03125, %v343_v38  ;;  %v584_v40 = vpop.f32.mrb[1].mxu1 }
 0x23f   :  { %v348_v41 = vadd.f32 1e-05, %v347_v39 }
 0x241   :  { %693 = vrsqrt.f32 %v348_v41 }
 0x24b   :  { %v694_v42 = vpop.eup %693 }
 0x24c   :  { %v350_v44 = vmul.f32 %v694_v42, %v202_v33 }
 0x24e   :  { %v358_v45 = vmul.f32 %v376_v43, %v350_v44 }
 0x250   :  { %359 = vst [vmem:[#allocation7] sm:$0xf] %v358_v45 }
 0x251   :  { %750 = shalt.err (!%p747_p6)
}
 0x252   :  { %s751_s16 = scalar_lea.hbm %s920_s3, 64 }
 0x253   :  { %p752_p7 = scmp.ne.s32.totalorder %s920_s3, %s751_s16  ;;  %p755_p8 = scmp.lt.u32.totalorder %s751_s16, %s920_s3 }
 0x255   :  { %p757_p9 = pnand %p755_p8, %p752_p7 }
 0x257   :  { %760 = shalt.err (!%p757_p9)
}
 0x258   :  { %369 = dma.vmem_to_hbm [thread:$0]  %s367_s12, 64, %s920_s3, [#allocation4]  }
 0x259   :  { %765 = dma.done.wait [#allocation4], 64  }
 0x25a   :  { %766 = vsyncadd [#allocation4], 4294967232 }
 0x25b   :  { %373 = vsyncpa [#allocation3], 1 }
 0x25c   :  { %374 = vsyncpa [#allocation6], 1 }
 0x25d   :  { %375 = vsyncpa [#allocation4], 1 }

</bundles_post_ra>
